<compile_context>
chip_gen: v5e
topology: v5e:2x2
jax: 0.10.0
libtpu: 0.0.40
codegen_flags: <defaults>
</compile_context>

<pallas_src>
import math
import numpy as np
import jax
import jax.numpy as jnp
from jax.experimental import pallas as pl
from jax.experimental.pallas import tpu as pltpu

# ------------------------- problem configuration -------------------------
N_NODES = 64          # number of graph nodes
N_FEATURES = 32       # number of input features
HIDDEN = 32           # args.layers == [HIDDEN, HIDDEN]
N_LABELS = 8          # number of target labels
LANE_PAD = 128        # features / hidden / label dims padded to a full lane width
ALPHA = 0.1           # teleport parameter
ITERATIONS = 5        # power-iteration count
NEG_BIG = -1e30       # "minus infinity" for the padded label columns
# dropout p is irrelevant in eval mode (identity)


def appnp_kernel(x_ref, w1_ref, b1_ref, w2_ref, b2_ref, a_ref, o_ref):
    """Entire APPNP forward on one VMEM-resident set of (padded, lane-dense) tiles."""
    # layer_1: X @ W1 + b1, relu.  Padded feature cols of X and padded rows/cols of
    # W1 / b1 are zero, so padded hidden columns of H1 are exactly 0 after relu.
    h1 = jnp.dot(x_ref[...], w1_ref[...],
                 preferred_element_type=jnp.float32) + b1_ref[...]
    h1 = jnp.maximum(h1, 0.0)

    # layer_2: H1 @ W2 + b2 -> (N, LANE_PAD).  Padded rows/cols of W2 / b2 are zero,
    # so padded label columns of H2 are exactly 0.
    h2 = jnp.dot(h1, w2_ref[...],
                 preferred_element_type=jnp.float32) + b2_ref[...]

    # APPNP tanh propagation (static unroll; ITERATIONS is small).
    # (1-alpha) is folded into a_ref at setup; alpha*H2 is loop-invariant.
    a_scaled = a_ref[...]                    # f32 (N, N)
    ah2 = ALPHA * h2                         # f32, hoisted
    z = h2
    for _ in range(ITERATIONS):
        z = jnp.tanh(jnp.dot(a_scaled, z,
                             preferred_element_type=jnp.float32) + ah2)

    # log_softmax along the label axis over the real columns only.
    lane = jax.lax.broadcasted_iota(jnp.int32, z.shape, 1)
    z = jnp.where(lane < N_LABELS, z, NEG_BIG)
    m = jnp.max(z, axis=1, keepdims=True)
    s = z - m
    lse = jnp.log(jnp.sum(jnp.exp(s), axis=1, keepdims=True))
    o_ref[...] = s - lse                     # full 128-lane, unmasked store


# ----------------------- one-time setup (hoisted prep) --------------------
def prepare_appnp_state(x, w1, b1, w2, b2, a_hat):
    """Pad all operands to 128 lanes, fold (1-alpha) into A_hat. Run ONCE at setup."""
    N, F = x.shape
    H = w1.shape[1]
    L = w2.shape[1]
    x_p = jnp.zeros((N, LANE_PAD), jnp.float32).at[:, :F].set(x)
    w1_p = jnp.zeros((LANE_PAD, LANE_PAD), jnp.float32).at[:F, :H].set(w1)
    b1_p = jnp.zeros((1, LANE_PAD), jnp.float32).at[:, :H].set(b1)
    w2_p = jnp.zeros((LANE_PAD, LANE_PAD), jnp.float32).at[:H, :L].set(w2)
    b2_p = jnp.zeros((1, LANE_PAD), jnp.float32).at[:, :L].set(b2)
    a_scaled = ((1.0 - ALPHA) * a_hat).astype(jnp.float32)        # (N, N)
    return x_p, w1_p, b1_p, w2_p, b2_p, a_scaled


# ------------------------------ forward pass ------------------------------
def _appnp_forward(x_p, w1_p, b1_p, w2_p, b2_p, a_scaled):
    N = x_p.shape[0]
    vmem = lambda: pl.BlockSpec(memory_space=pltpu.MemorySpace.VMEM)

    flops = (2 * N * LANE_PAD * LANE_PAD                 # X @ W1
             + 2 * N * LANE_PAD * LANE_PAD               # H1 @ W2
             + ITERATIONS * 2 * N * N * LANE_PAD)        # A @ Z
    transcendentals = (ITERATIONS + 1) * N * LANE_PAD    # tanh + exp
    bytes_accessed = 4 * (x_p.size + w1_p.size + b1_p.size + w2_p.size
                          + b2_p.size + a_scaled.size + N * LANE_PAD)

    out = pl.pallas_call(
        appnp_kernel,
        out_shape=jax.ShapeDtypeStruct((N, LANE_PAD), jnp.float32),
        in_specs=[vmem(), vmem(), vmem(), vmem(), vmem(), vmem()],
        out_specs=vmem(),
        cost_estimate=pl.CostEstimate(
            flops=flops,
            transcendentals=transcendentals,
            bytes_accessed=bytes_accessed),
    )(x_p, w1_p, b1_p, w2_p, b2_p, a_scaled)

    return out[:, :N_LABELS]


appnp_forward = jax.jit(_appnp_forward)


# ------------------------------ setup glue --------------------------------
def build_normalized_adjacency(n):
    """Ring graph -> A_tilde_hat = D^-1/2 (A + I) D^-1/2 as a dense matrix."""
    A = np.zeros((n, n), dtype=np.float32)
    for i in range(n):
        j = (i + 1) % n
        A[i, j] = 1.0
        A[j, i] = 1.0
    A_tilde = A + np.eye(n, dtype=np.float32)
    degrees = A_tilde.sum(axis=0)
    d_inv_sqrt = degrees ** -0.5
    return (d_inv_sqrt[:, None] * A_tilde) * d_inv_sqrt[None, :]


def xavier_uniform(key, fan_in, fan_out):
    bound = math.sqrt(6.0 / (fan_in + fan_out))
    return jax.random.uniform(key, (fan_in, fan_out), jnp.float32, -bound, bound)


def uniform_bias(key, size):
    stdv = 1.0 / math.sqrt(size)
    return jax.random.uniform(key, (1, size), jnp.float32, -stdv, stdv)


if __name__ == "__main__":
    key = jax.random.PRNGKey(0)
    k_feat, k_w1, k_b1, k_w2, k_b2 = jax.random.split(key, 5)

    # Sparse feature matrix (indices / values) -> dense X via scatter-add (glue).
    nnz = 2 * N_NODES
    rows = np.concatenate([np.arange(N_NODES), np.arange(N_NODES)]).astype(np.int32)
    cols = np.concatenate([(np.arange(N_NODES) * 7) % N_FEATURES,
                           (np.arange(N_NODES) * 3 + 1) % N_FEATURES]).astype(np.int32)
    feature_indices = jnp.stack([jnp.asarray(rows), jnp.asarray(cols)])     # (2, nnz)
    feature_values = jax.random.uniform(k_feat, (nnz,), jnp.float32)
    x_dense = jnp.zeros((N_NODES, N_FEATURES), jnp.float32).at[
        feature_indices[0], feature_indices[1]].add(feature_values)

    # Deterministic parameter init mirroring the PyTorch module.
    w1 = xavier_uniform(k_w1, N_FEATURES, HIDDEN)
    b1 = uniform_bias(k_b1, HIDDEN)
    w2 = xavier_uniform(k_w2, HIDDEN, N_LABELS)
    b2 = uniform_bias(k_b2, N_LABELS)

    a_hat = jnp.asarray(build_normalized_adjacency(N_NODES))

    # One-time prep (padding / (1-alpha) fold) — NOT part of the per-call path.
    state = prepare_appnp_state(x_dense, w1, b1, w2, b2, a_hat)
    state = jax.block_until_ready(state)

    out = appnp_forward(*state)
    out = jax.block_until_ready(out)

    # sanity: log-softmax rows must sum to ~1 in prob space
    assert out.shape == (N_NODES, N_LABELS)
    row_sums = jnp.exp(out).sum(axis=1)
    assert bool(jnp.allclose(row_sums, 1.0, atol=1e-4))

    print("KERNEL_OK")
</pallas_src>

<mosaic_0001>
module attributes {stable_mosaic.version = 11 : i64} {
  func.func @appnp_kernel(%arg0: memref<64x128xf32, #tpu.memory_space<vmem>>, %arg1: memref<128x128xf32, #tpu.memory_space<vmem>>, %arg2: memref<1x128xf32, #tpu.memory_space<vmem>>, %arg3: memref<128x128xf32, #tpu.memory_space<vmem>>, %arg4: memref<1x128xf32, #tpu.memory_space<vmem>>, %arg5: memref<64x64xf32, #tpu.memory_space<vmem>>, %arg6: memref<64x128xf32, #tpu.memory_space<vmem>>) attributes {dimension_semantics = [], scalar_prefetch = 0 : i64, scratch_operands = 0 : i64, tpu.core_type = #tpu.core_type<tc>} {
    %c0 = arith.constant 0 : index
    %c0_0 = arith.constant 0 : index
    %0 = vector.load %arg0[%c0, %c0_0] : memref<64x128xf32, #tpu.memory_space<vmem>>, vector<64x128xf32>
    %c0_1 = arith.constant 0 : index
    %c0_2 = arith.constant 0 : index
    %1 = vector.load %arg1[%c0_1, %c0_2] : memref<128x128xf32, #tpu.memory_space<vmem>>, vector<128x128xf32>
    %cst = arith.constant dense<0.000000e+00> : vector<64x128xf32>
    %2 = tpu.matmul %0, %1, %cst {dimension_numbers = #tpu.dot_dimension_numbers<[1], [0], [0], [1], [0, 0, 1, 1], [], []>} : vector<64x128xf32>, vector<128x128xf32>, vector<64x128xf32> -> vector<64x128xf32>
    %c0_3 = arith.constant 0 : index
    %c0_4 = arith.constant 0 : index
    %3 = vector.load %arg2[%c0_3, %c0_4] : memref<1x128xf32, #tpu.memory_space<vmem>>, vector<1x128xf32>
    %4 = vector.broadcast %3 : vector<1x128xf32> to vector<64x128xf32>
    %5 = arith.addf %2, %4 : vector<64x128xf32>
    %cst_5 = arith.constant 0.000000e+00 : f32
    %6 = vector.broadcast %cst_5 : f32 to vector<64x128xf32>
    %7 = arith.maximumf %5, %6 : vector<64x128xf32>
    %c0_6 = arith.constant 0 : index
    %c0_7 = arith.constant 0 : index
    %8 = vector.load %arg3[%c0_6, %c0_7] : memref<128x128xf32, #tpu.memory_space<vmem>>, vector<128x128xf32>
    %cst_8 = arith.constant dense<0.000000e+00> : vector<64x128xf32>
    %9 = tpu.matmul %7, %8, %cst_8 {dimension_numbers = #tpu.dot_dimension_numbers<[1], [0], [0], [1], [0, 0, 1, 1], [], []>} : vector<64x128xf32>, vector<128x128xf32>, vector<64x128xf32> -> vector<64x128xf32>
    %c0_9 = arith.constant 0 : index
    %c0_10 = arith.constant 0 : index
    %10 = vector.load %arg4[%c0_9, %c0_10] : memref<1x128xf32, #tpu.memory_space<vmem>>, vector<1x128xf32>
    %11 = vector.broadcast %10 : vector<1x128xf32> to vector<64x128xf32>
    %12 = arith.addf %9, %11 : vector<64x128xf32>
    %c0_11 = arith.constant 0 : index
    %c0_12 = arith.constant 0 : index
    %13 = vector.load %arg5[%c0_11, %c0_12] : memref<64x64xf32, #tpu.memory_space<vmem>>, vector<64x64xf32>
    %cst_13 = arith.constant 1.000000e-01 : f32
    %14 = vector.broadcast %cst_13 : f32 to vector<64x128xf32>
    %15 = arith.mulf %14, %12 : vector<64x128xf32>
    %cst_14 = arith.constant dense<0.000000e+00> : vector<64x128xf32>
    %16 = tpu.matmul %13, %12, %cst_14 {dimension_numbers = #tpu.dot_dimension_numbers<[1], [0], [0], [1], [0, 0, 1, 1], [], []>} : vector<64x64xf32>, vector<64x128xf32>, vector<64x128xf32> -> vector<64x128xf32>
    %17 = arith.addf %16, %15 : vector<64x128xf32>
    %18 = math.tanh %17 : vector<64x128xf32>
    %cst_15 = arith.constant dense<0.000000e+00> : vector<64x128xf32>
    %19 = tpu.matmul %13, %18, %cst_15 {dimension_numbers = #tpu.dot_dimension_numbers<[1], [0], [0], [1], [0, 0, 1, 1], [], []>} : vector<64x64xf32>, vector<64x128xf32>, vector<64x128xf32> -> vector<64x128xf32>
    %20 = arith.addf %19, %15 : vector<64x128xf32>
    %21 = math.tanh %20 : vector<64x128xf32>
    %cst_16 = arith.constant dense<0.000000e+00> : vector<64x128xf32>
    %22 = tpu.matmul %13, %21, %cst_16 {dimension_numbers = #tpu.dot_dimension_numbers<[1], [0], [0], [1], [0, 0, 1, 1], [], []>} : vector<64x64xf32>, vector<64x128xf32>, vector<64x128xf32> -> vector<64x128xf32>
    %23 = arith.addf %22, %15 : vector<64x128xf32>
    %24 = math.tanh %23 : vector<64x128xf32>
    %cst_17 = arith.constant dense<0.000000e+00> : vector<64x128xf32>
    %25 = tpu.matmul %13, %24, %cst_17 {dimension_numbers = #tpu.dot_dimension_numbers<[1], [0], [0], [1], [0, 0, 1, 1], [], []>} : vector<64x64xf32>, vector<64x128xf32>, vector<64x128xf32> -> vector<64x128xf32>
    %26 = arith.addf %25, %15 : vector<64x128xf32>
    %27 = math.tanh %26 : vector<64x128xf32>
    %cst_18 = arith.constant dense<0.000000e+00> : vector<64x128xf32>
    %28 = tpu.matmul %13, %27, %cst_18 {dimension_numbers = #tpu.dot_dimension_numbers<[1], [0], [0], [1], [0, 0, 1, 1], [], []>} : vector<64x64xf32>, vector<64x128xf32>, vector<64x128xf32> -> vector<64x128xf32>
    %29 = arith.addf %28, %15 : vector<64x128xf32>
    %30 = math.tanh %29 : vector<64x128xf32>
    %31 = tpu.iota {dimensions = array<i32: 1>} : vector<64x128xi32>
    %c8_i32 = arith.constant 8 : i32
    %32 = vector.broadcast %c8_i32 : i32 to vector<64x128xi32>
    %33 = arith.cmpi slt, %31, %32 : vector<64x128xi32>
    %cst_19 = arith.constant -1.000000e+30 : f32
    %34 = vector.broadcast %cst_19 : f32 to vector<64x128xf32>
    %35 = arith.select %33, %30, %34 : vector<64x128xi1>, vector<64x128xf32>
    %cst_20 = arith.constant dense<0xFF800000> : vector<64xf32>
    %36 = vector.multi_reduction <maximumf>, %35, %cst_20 [1] : vector<64x128xf32> to vector<64xf32>
    %37 = vector.shape_cast %36 : vector<64xf32> to vector<64x1xf32>
    %38 = vector.broadcast %37 : vector<64x1xf32> to vector<64x128xf32>
    %39 = arith.subf %35, %38 : vector<64x128xf32>
    %40 = math.exp %39 : vector<64x128xf32>
    %cst_21 = arith.constant dense<0.000000e+00> : vector<64xf32>
    %41 = vector.multi_reduction <add>, %40, %cst_21 [1] : vector<64x128xf32> to vector<64xf32>
    %42 = vector.shape_cast %41 : vector<64xf32> to vector<64x1xf32>
    %43 = math.log %42 : vector<64x1xf32>
    %44 = vector.broadcast %43 : vector<64x1xf32> to vector<64x128xf32>
    %45 = arith.subf %39, %44 : vector<64x128xf32>
    %c0_22 = arith.constant 0 : index
    %c0_23 = arith.constant 0 : index
    %46 = vector.load %arg6[%c0_22, %c0_23] : memref<64x128xf32, #tpu.memory_space<vmem>>, vector<64x128xf32>
    tpu.vector_store %arg6[%c0_22, %c0_23], %45 {strides = array<i32>} : memref<64x128xf32, #tpu.memory_space<vmem>>, vector<64x128xf32>,
    return
  }
}

</mosaic_0001>

<bundles_post_ra>
// kernel: _appnp_forward.1
= control target key start
LH: loop header
LB: loop body
LE: loop exit
PB: predicated region body
PF: predicated region fallthrough
CT: control target
= control target key end

     0   :  { %11 = vsyncpa [#allocation3], 0  ;;  %s1137_s0 = inlined_call_operand.hbm [shape: f32[64,128], index: 0, kind: input, shape index: {}]   ;;  %s1138_s1 = inlined_call_operand.hbm [shape: f32[128,128], index: 1, kind: input, shape index: {}]   ;;  %s1139_s2 = inlined_call_operand.vmem [shape: f32[1,128], index: 2, kind: input, shape index: {}]   ;;  %s1140_s3 = inlined_call_operand.hbm [shape: f32[128,128], index: 3, kind: input, shape index: {}]   ;;  %s1141_s4 = inlined_call_operand.vmem [shape: f32[1,128], index: 4, kind: input, shape index: {}]   ;;  %s1142_s5 = inlined_call_operand.hbm [shape: f32[64,64], index: 5, kind: input, shape index: {}]   ;;  %s1143_s6 = inlined_call_operand.vmem [shape: f32[64,128], index: 6, kind: output, shape index: {}]  }
   0x1   :  { %12 = vsyncpa [#allocation5], 0 }
   0x2   :  { %13 = vsyncpa [#allocation8], 0  ;;  %s31_s23 = sshll.u32 %s1138_s1, 4  ;;  %s886_s24 = smov [#allocation4]   ;;  %s32_s23 = int_to_ptr.hbm [resolvable:$true] %s31_s23 }
   0x3   :  { %s33_s25 = sshll.u32 %s886_s24, 4  ;;  %s18_s28 = sshll.u32 %s1137_s0, 4  ;;  %s34_s25 = int_to_ptr.vmem [resolvable:$true] %s33_s25  ;;  %s19_s28 = int_to_ptr.hbm [resolvable:$true] %s18_s28 }
   0x4   :  { %s887_s29 = smov 128   ;;  %s888_s30 = smov 8  }
   0x5   :  { %39 = dma.hbm_to_vmem [thread:$0]  %s32_s23, 2048, %s34_s25, [#allocation5], %s887_s29, %s887_s29, %s888_s30  }
   0x6   :  { %s889_s7 = smov [#allocation2]   ;;  %s46_s11 = sshll.u32 %s1140_s3, 4  ;;  %s47_s11 = int_to_ptr.hbm [resolvable:$true] %s46_s11 }
   0x7   :  { %s20_s8 = sshll.u32 %s889_s7, 4  ;;  %s61_s13 = sshll.u32 %s1142_s5, 4  ;;  %s21_s8 = int_to_ptr.vmem [resolvable:$true] %s20_s8  ;;  %s62_s13 = int_to_ptr.hbm [resolvable:$true] %s61_s13 }
   0x8   :  { %26 = dma.hbm_to_vmem [thread:$0]  %s19_s28, 1024, %s21_s8, [#allocation3], %s887_s29, %s887_s29, %s888_s30  }
   0x9   :  { %s890_s14 = smov [#allocation6]   ;;  %s891_s0 = smov [#allocation7]  }
   0xa   :  { %s48_s15 = sshll.u32 %s890_s14, 4  ;;  %s63_s16 = sshll.u32 %s891_s0, 4  ;;  %s49_s15 = int_to_ptr.vmem [resolvable:$true] %s48_s15  ;;  %s64_s16 = int_to_ptr.vmem [resolvable:$true] %s63_s16 }
   0xb   :  { %54 = dma.hbm_to_vmem [thread:$0]  %s47_s11, 2048, %s49_s15, [#allocation5], %s887_s29, %s887_s29, %s888_s30  }
   0xc   :  { %69 = dma.hbm_to_vmem [thread:$0]  %s62_s13, 1024, %s64_s16, [#allocation8], %s887_s29, %s887_s29, %s888_s30  }
   0xd   :  { %880 = dma.done.wait [#allocation3], 1024  }
   0xe   :  { %881 = vsyncadd [#allocation3], 4294966272 }
   0xf   :  { %882 = dma.done.wait [#allocation5], 4096  }
  0x10   :  { %883 = vsyncadd [#allocation5], 4294963200 }
  0x11   :  { %884 = dma.done.wait [#allocation8], 1024  }
  0x12   :  { %885 = vsyncadd [#allocation8], 4294966272  ;;  %v109_v0 = vld [vmem:[#allocation4 + $0x78] sm:$0xff]  ;;  %v108_v1 = vld [vmem:[#allocation4 + $0x70] sm:$0xff]  ;;  %vm240_vm0 = vcmask 523264  }
  0x13   :  { %114 = vmatpush.msra.mxu0 %v109_v0  ;;  %v107_v2 = vld [vmem:[#allocation4 + $0x68] sm:$0xff]  ;;  %v106_v3 = vld [vmem:[#allocation4 + $0x60] sm:$0xff]  ;;  %v105_v4 = vld [vmem:[#allocation4 + $0x58] sm:$0xff] }
  0x14   :  { %v104_v5 = vld [vmem:[#allocation4 + $0x50] sm:$0xff]  ;;  %v103_v6 = vld [vmem:[#allocation4 + $0x48] sm:$0xff]  ;;  %v102_v7 = vld [vmem:[#allocation4 + $0x40] sm:$0xff] }
  0x15   :  { %115 = vmatpush.msra.mxu0 %v108_v1  ;;  %v101_v8 = vld [vmem:[#allocation4 + $0x38] sm:$0xff]  ;;  %v100_v9 = vld [vmem:[#allocation4 + $0x30] sm:$0xff]  ;;  %v99_v10 = vld [vmem:[#allocation4 + $0x28] sm:$0xff] }
  0x16   :  { %v98_v11 = vld [vmem:[#allocation4 + $0x20] sm:$0xff]  ;;  %v97_v12 = vld [vmem:[#allocation4 + $0x18] sm:$0xff]  ;;  %v96_v13 = vld [vmem:[#allocation4 + $0x10] sm:$0xff] }
  0x17   :  { %116 = vmatpush.msra.mxu0 %v107_v2  ;;  %v95_v14 = vld [vmem:[#allocation4 + $0x8] sm:$0xff]  ;;  %v94_v15 = vld [vmem:[#allocation4] sm:$0xff]  ;;  %v88_v18 = vld [vmem:[#allocation2 + $0x10] sm:$0xff] }
  0x18   :  { %v86_v16 = vld [vmem:[#allocation2] sm:$0xff]  ;;  %v87_v17 = vld [vmem:[#allocation2 + $0x8] sm:$0xff]  ;;  %v89_v19 = vld [vmem:[#allocation2 + $0x18] sm:$0xff] }
  0x19   :  { %117 = vmatpush.msra.mxu0 %v106_v3  ;;  %v178_v20 = vld [vmem:[#allocation6 + $0x78] sm:$0xff]  ;;  %v177_v21 = vld [vmem:[#allocation6 + $0x70] sm:$0xff]  ;;  %v176_v22 = vld [vmem:[#allocation6 + $0x68] sm:$0xff] }
  0x1a   :  { %183 = vmatpush.msra.mxu1 %v178_v20  ;;  %v175_v23 = vld [vmem:[#allocation6 + $0x60] sm:$0xff]  ;;  %v174_v25 = vld [vmem:[#allocation6 + $0x58] sm:$0xff]  ;;  %v173_v26 = vld [vmem:[#allocation6 + $0x50] sm:$0xff] }
  0x1b   :  { %118 = vmatpush.msra.mxu0 %v105_v4  ;;  %v90_v24 = vld [vmem:[#allocation2 + $0x20] sm:$0xff]  ;;  %v172_v27 = vld [vmem:[#allocation6 + $0x48] sm:$0xff]  ;;  %v170_v30 = vld [vmem:[#allocation6 + $0x38] sm:$0xff] }
  0x1c   :  { %184 = vmatpush.msra.mxu1 %v177_v21  ;;  %v171_v28 = vld [vmem:[#allocation6 + $0x40] sm:$0xff]  ;;  %v91_v29 = vld [vmem:[#allocation2 + $0x28] sm:$0xff]  ;;  %v169_v31 = vld [vmem:[#allocation6 + $0x30] sm:$0xff] }
  0x1d   :  { %119 = vmatpush.msra.mxu0 %v104_v5  ;;  %v168_v32 = vld [vmem:[#allocation6 + $0x28] sm:$0xff]  ;;  %v167_v33 = vld [vmem:[#allocation6 + $0x20] sm:$0xff]  ;;  %v92_v34 = vld [vmem:[#allocation2 + $0x30] sm:$0xff] }
  0x1e   :  { %185 = vmatpush.msra.mxu1 %v176_v22  ;;  %v166_v35 = vld [vmem:[#allocation6 + $0x18] sm:$0xff]  ;;  %v165_v37 = vld [vmem:[#allocation6 + $0x10] sm:$0xff]  ;;  %v164_v38 = vld [vmem:[#allocation6 + $0x8] sm:$0xff] }
  0x1f   :  { %120 = vmatpush.msra.mxu0 %v103_v6  ;;  %v93_v36 = vld [vmem:[#allocation2 + $0x38] sm:$0xff]  ;;  %v163_v39 = vld [vmem:[#allocation6] sm:$0xff]  ;;  %v953_v20 = vld [vmem:[#allocation7 + $0x10] sm:$0xff] }
  0x20   :  { %186 = vmatpush.msra.mxu1 %v175_v23  ;;  %v670_v40 = vld [vmem:[%s1139_s2] ss:$0 sm:$0xff]  ;;  %v957_v21 = vld [vmem:[#allocation7 + $0x18] sm:$0xff]  ;;  %v965_v23 = vld [vmem:[#allocation7 + $0x28] sm:$0xff] }
  0x21   :  { %121 = vmatpush.msra.mxu0 %v102_v7  ;;  %v961_v22 = vld [vmem:[#allocation7 + $0x20] sm:$0xff] }
  0x22   :  { %187 = vmatpush.msra.mxu1 %v174_v25  ;;  %v973_v25 = vld [vmem:[#allocation7 + $0x38] sm:$0xff] }
  0x23   :  { %122 = vmatpush.msra.mxu0 %v101_v8  ;;  %v671_v8 = vld [vmem:[%s1141_s4] ss:$0 sm:$0xff] }
  0x24   :  { %188 = vmatpush.msra.mxu1 %v173_v26 }
  0x25   :  { %123 = vmatpush.msra.mxu0 %v100_v9 }
  0x26   :  { %189 = vmatpush.msra.mxu1 %v172_v27 }
  0x27   :  { %124 = vmatpush.msra.mxu0 %v99_v10 }
  0x28   :  { %190 = vmatpush.msra.mxu1 %v171_v28 }
  0x29   :  { %125 = vmatpush.msra.mxu0 %v98_v11 }
  0x2a   :  { %191 = vmatpush.msra.mxu1 %v170_v30 }
  0x2b   :  { %126 = vmatpush.msra.mxu0 %v97_v12 }
  0x2c   :  { %192 = vmatpush.msra.mxu1 %v169_v31 }
  0x2d   :  { %127 = vmatpush.msra.mxu0 %v96_v13 }
  0x2e   :  { %193 = vmatpush.msra.mxu1 %v168_v32 }
  0x2f   :  { %128 = vmatpush.msra.mxu0 %v95_v14 }
  0x30   :  { %194 = vmatpush.msra.mxu1 %v167_v33 }
  0x31   :  { %129 = vmatpush.msra.mxu0 %v94_v15 }
  0x32   :  { %130 = vmatmul.f32.vlgmr.msra.gmra.mxu0 %v86_v16  ;;  %195 = vmatpush.msra.mxu1 %v166_v35 }
  0x34   :  { %196 = vmatpush.msra.mxu1 %v165_v37 }
  0x36   :  { %197 = vmatpush.msra.mxu1 %v164_v38 }
  0x38   :  { %198 = vmatpush.msra.mxu1 %v163_v39 }
  0x3a   :  { %133 = vmatmul.f32.gmra.mxu0 %v87_v17 }
  0x42   :  { %136 = vmatmul.f32.gmra.mxu0 %v88_v18  ;;  %v945_v18 = vld [vmem:[#allocation7] sm:$0xff] }
  0x4a   :  { %139 = vmatmul.f32.gmra.mxu0 %v89_v19  ;;  %v949_v19 = vld [vmem:[#allocation7 + $0x8] sm:$0xff] }
  0x52   :  { %142 = vmatmul.f32.gmra.mxu0 %v90_v24  ;;  %v969_v24 = vld [vmem:[#allocation7 + $0x30] sm:$0xff] }
  0x5a   :  { %145 = vmatmul.f32.gmra.mxu0 %v91_v29 }
  0x62   :  { %148 = vmatmul.f32.gmra.mxu0 %v92_v34 }
  0x6a   :  { %151 = vmatmul.f32.gmra.mxu0 %v93_v36 }
  0xaf   :  { %v131_v41 = vpop.f32.mrf.mxu0 }
  0xb0   :  { %v132_v42 = vadd.f32 %v670_v40, %v131_v41 }
  0xb2   :  { %v155_v43 = vmax.f32 %v132_v42, 0.0 }
  0xb4   :  { %199 = vmatmul.f32.vlgmr.msra.gmra.mxu1 %v155_v43 }
  0xb7   :  { %v134_v44 = vpop.f32.mrf.mxu0 }
  0xb8   :  { %v135_v45 = vadd.f32 %v670_v40, %v134_v44 }
  0xba   :  { %v156_v46 = vmax.f32 %v135_v45, 0.0 }
  0xbc   :  { %202 = vmatmul.f32.gmra.mxu1 %v156_v46 }
  0xbf   :  { %v137_v47 = vpop.f32.mrf.mxu0 }
  0xc0   :  { %v138_v48 = vadd.f32 %v670_v40, %v137_v47 }
  0xc2   :  { %v157_v49 = vmax.f32 %v138_v48, 0.0 }
  0xc4   :  { %205 = vmatmul.f32.gmra.mxu1 %v157_v49 }
  0xc7   :  { %v140_v50 = vpop.f32.mrf.mxu0 }
  0xc8   :  { %v141_v51 = vadd.f32 %v670_v40, %v140_v50 }
  0xca   :  { %v158_v52 = vmax.f32 %v141_v51, 0.0 }
  0xcc   :  { %208 = vmatmul.f32.gmra.mxu1 %v158_v52 }
  0xcf   :  { %v143_v53 = vpop.f32.mrf.mxu0 }
  0xd0   :  { %v144_v54 = vadd.f32 %v670_v40, %v143_v53 }
  0xd2   :  { %v159_v55 = vmax.f32 %v144_v54, 0.0 }
  0xd4   :  { %211 = vmatmul.f32.gmra.mxu1 %v159_v55 }
  0xd7   :  { %v146_v56 = vpop.f32.mrf.mxu0 }
  0xd8   :  { %v147_v57 = vadd.f32 %v670_v40, %v146_v56 }
  0xda   :  { %v160_v58 = vmax.f32 %v147_v57, 0.0 }
  0xdc   :  { %214 = vmatmul.f32.gmra.mxu1 %v160_v58 }
  0xdf   :  { %v149_v59 = vpop.f32.mrf.mxu0 }
  0xe0   :  { %v150_v60 = vadd.f32 %v670_v40, %v149_v59 }
  0xe2   :  { %v161_v61 = vmax.f32 %v150_v60, 0.0 }
  0xe4   :  { %217 = vmatmul.f32.gmra.mxu1 %v161_v61 }
  0xe7   :  { %v152_v62 = vpop.f32.mrf.mxu0 }
  0xe8   :  { %v153_v63 = vadd.f32 %v670_v40, %v152_v62 }
  0xea   :  { %v162_v0 = vmax.f32 %v153_v63, 0.0 }
  0xec   :  { %220 = vmatmul.f32.gmra.mxu1 %v162_v0 }
 0x131   :  { %v200_v1 = vpop.f32.mrf.mxu1 }
 0x132   :  { %v201_v17 = vadd.f32 %v671_v8, %v200_v1 }
 0x134   :  { %v997_v49 = vmul.f32 0.1, %v201_v17 }
 0x139   :  { %v203_v2 = vpop.f32.mrf.mxu1 }
 0x13a   :  { %v204_v16 = vadd.f32 %v671_v8, %v203_v2 }
 0x13c   :  { %v994_v46 = vmul.f32 0.1, %v204_v16 }
 0x141   :  { %v206_v3 = vpop.f32.mrf.mxu1 }
 0x142   :  { %v207_v15 = vadd.f32 %v671_v8, %v206_v3 }
 0x144   :  { %v991_v43 = vmul.f32 0.1, %v207_v15 }
 0x149   :  { %v209_v4 = vpop.f32.mrf.mxu1 }
 0x14a   :  { %v210_v14 = vadd.f32 %v671_v8, %v209_v4 }
 0x14c   :  { %v988_v41 = vmul.f32 0.1, %v210_v14 }
 0x151   :  { %v212_v5 = vpop.f32.mrf.mxu1 }
 0x152   :  { %v213_v13 = vadd.f32 %v671_v8, %v212_v5 }
 0x154   :  { %v985_v39 = vmul.f32 0.1, %v213_v13 }
 0x159   :  { %v215_v6 = vpop.f32.mrf.mxu1 }
 0x15a   :  { %v216_v12 = vadd.f32 %v671_v8, %v215_v6 }
 0x15c   :  { %v981_v36 = vmul.f32 0.1, %v216_v12 }
 0x161   :  { %v218_v7 = vpop.f32.mrf.mxu1 }
 0x162   :  { %v219_v11 = vadd.f32 %v671_v8, %v218_v7 }
 0x164   :  { %v977_v33 = vmul.f32 0.1, %v219_v11 }
 0x169   :  { %v221_v9 = vpop.f32.mrf.mxu1 }
 0x16a   :  { %v222_v10 = vadd.f32 %v671_v8, %v221_v9 }
 0x16c   :  { %273 = vmatpush.msra.mxu2 %v222_v10  ;;  %v979_v34 = vmul.f32 0.1, %v222_v10 }
 0x16e   :  { %274 = vmatpush.msra.mxu2 %v219_v11 }
 0x170   :  { %275 = vmatpush.msra.mxu2 %v216_v12 }
 0x172   :  { %276 = vmatpush.msra.mxu2 %v213_v13 }
 0x174   :  { %277 = vmatpush.msra.mxu2 %v210_v14 }
 0x176   :  { %278 = vmatpush.msra.mxu2 %v207_v15 }
 0x178   :  { %279 = vmatpush.msra.mxu2 %v204_v16 }
 0x17a   :  { %280 = vmatpush.msra.mxu2 %v201_v17 }
 0x17b   :  { %616 = vmatmul.msk.f32.vlgmr.msra.gmra.mxu2 %vm240_vm0, %v945_v18 }
 0x183   :  { %617 = vmatmul.msk.f32.gmra.mxu2 %vm240_vm0, %v949_v19 }
 0x18b   :  { %618 = vmatmul.msk.f32.gmra.mxu2 %vm240_vm0, %v953_v20 }
 0x193   :  { %619 = vmatmul.msk.f32.gmra.mxu2 %vm240_vm0, %v957_v21 }
 0x19b   :  { %620 = vmatmul.msk.f32.gmra.mxu2 %vm240_vm0, %v961_v22 }
 0x1a3   :  { %621 = vmatmul.msk.f32.gmra.mxu2 %vm240_vm0, %v965_v23 }
 0x1ab   :  { %622 = vmatmul.msk.f32.gmra.mxu2 %vm240_vm0, %v969_v24 }
 0x1b3   :  { %623 = vmatmul.msk.f32.gmra.mxu2 %vm240_vm0, %v973_v25 }
 0x1fe   :  { %v282_v26 = vpop.f32.mrf.mxu2 }
 0x1ff   :  { %v283_v52 = vadd.f32 %v282_v26, %v997_v49 }
 0x206   :  { %v285_v27 = vpop.f32.mrf.mxu2 }
 0x207   :  { %v286_v50 = vadd.f32 %v285_v27, %v994_v46 }
 0x20e   :  { %v288_v28 = vpop.f32.mrf.mxu2 }
 0x20f   :  { %v289_v47 = vadd.f32 %v288_v28, %v991_v43 }
 0x216   :  { %v291_v29 = vpop.f32.mrf.mxu2 }
 0x217   :  { %v292_v44 = vadd.f32 %v291_v29, %v988_v41 }
 0x21e   :  { %v294_v30 = vpop.f32.mrf.mxu2 }
 0x21f   :  { %v295_v42 = vadd.f32 %v294_v30, %v985_v39 }
 0x226   :  { %v297_v31 = vpop.f32.mrf.mxu2 }
 0x227   :  { %v298_v40 = vadd.f32 %v297_v31, %v981_v36 }
 0x22e   :  { %v300_v32 = vpop.f32.mrf.mxu2 }
 0x22f   :  { %v301_v37 = vadd.f32 %v300_v32, %v977_v33 }
 0x236   :  { %v303_v35 = vpop.f32.mrf.mxu2 }
 0x237   :  { %v304_v38 = vadd.f32 %v303_v35, %v979_v34 }
 0x239   :  { %672 = vtanh.f32 %v304_v38 }
 0x23a   :  { %674 = vtanh.f32 %v301_v37 }
 0x23b   :  { %676 = vtanh.f32 %v298_v40 }
 0x23c   :  { %678 = vtanh.f32 %v295_v42 }
 0x23d   :  { %680 = vtanh.f32 %v292_v44 }
 0x23e   :  { %682 = vtanh.f32 %v289_v47 }
 0x23f   :  { %v673_v45 = vpop.eup %672  ;;  %684 = vtanh.f32 %v286_v50 }
 0x240   :  { %322 = vmatpush.msra.mxu3 %v673_v45  ;;  %v675_v48 = vpop.eup %674  ;;  %686 = vtanh.f32 %v283_v52 }
 0x241   :  { %v677_v51 = vpop.eup %676 }
 0x242   :  { %323 = vmatpush.msra.mxu3 %v675_v48  ;;  %v679_v53 = vpop.eup %678 }
 0x243   :  { %v681_v54 = vpop.eup %680 }
 0x244   :  { %324 = vmatpush.msra.mxu3 %v677_v51  ;;  %v683_v55 = vpop.eup %682 }
 0x245   :  { %v685_v56 = vpop.eup %684 }
 0x246   :  { %325 = vmatpush.msra.mxu3 %v679_v53  ;;  %v687_v57 = vpop.eup %686 }
 0x248   :  { %326 = vmatpush.msra.mxu3 %v681_v54 }
 0x24a   :  { %327 = vmatpush.msra.mxu3 %v683_v55 }
 0x24c   :  { %328 = vmatpush.msra.mxu3 %v685_v56 }
 0x24e   :  { %329 = vmatpush.msra.mxu3 %v687_v57 }
 0x24f   :  { %624 = vmatmul.msk.f32.vlgmr.msra.gmra.mxu3 %vm240_vm0, %v945_v18 }
 0x257   :  { %625 = vmatmul.msk.f32.gmra.mxu3 %vm240_vm0, %v949_v19 }
 0x25f   :  { %626 = vmatmul.msk.f32.gmra.mxu3 %vm240_vm0, %v953_v20 }
 0x267   :  { %627 = vmatmul.msk.f32.gmra.mxu3 %vm240_vm0, %v957_v21 }
 0x26f   :  { %628 = vmatmul.msk.f32.gmra.mxu3 %vm240_vm0, %v961_v22 }
 0x277   :  { %629 = vmatmul.msk.f32.gmra.mxu3 %vm240_vm0, %v965_v23 }
 0x27f   :  { %630 = vmatmul.msk.f32.gmra.mxu3 %vm240_vm0, %v969_v24 }
 0x287   :  { %631 = vmatmul.msk.f32.gmra.mxu3 %vm240_vm0, %v973_v25 }
 0x2d2   :  { %v331_v58 = vpop.f32.mrf.mxu3 }
 0x2d3   :  { %v332_v12 = vadd.f32 %v331_v58, %v997_v49 }
 0x2da   :  { %v334_v59 = vpop.f32.mrf.mxu3 }
 0x2db   :  { %v335_v10 = vadd.f32 %v334_v59, %v994_v46 }
 0x2e2   :  { %v337_v60 = vpop.f32.mrf.mxu3 }
 0x2e3   :  { %v338_v8 = vadd.f32 %v337_v60, %v991_v43 }
 0x2ea   :  { %v340_v61 = vpop.f32.mrf.mxu3 }
 0x2eb   :  { %v341_v6 = vadd.f32 %v340_v61, %v988_v41 }
 0x2f2   :  { %v343_v62 = vpop.f32.mrf.mxu3 }
 0x2f3   :  { %v344_v5 = vadd.f32 %v343_v62, %v985_v39 }
 0x2fa   :  { %v346_v63 = vpop.f32.mrf.mxu3 }
 0x2fb   :  { %v347_v4 = vadd.f32 %v346_v63, %v981_v36 }
 0x302   :  { %v349_v0 = vpop.f32.mrf.mxu3 }
 0x303   :  { %v350_v2 = vadd.f32 %v349_v0, %v977_v33 }
 0x30a   :  { %v352_v1 = vpop.f32.mrf.mxu3 }
 0x30b   :  { %v353_v3 = vadd.f32 %v352_v1, %v979_v34 }
 0x30d   :  { %688 = vtanh.f32 %v353_v3 }
 0x30e   :  { %690 = vtanh.f32 %v350_v2 }
 0x30f   :  { %692 = vtanh.f32 %v347_v4 }
 0x310   :  { %694 = vtanh.f32 %v344_v5 }
 0x311   :  { %696 = vtanh.f32 %v341_v6 }
 0x312   :  { %698 = vtanh.f32 %v338_v8 }
 0x313   :  { %v689_v7 = vpop.eup %688  ;;  %700 = vtanh.f32 %v335_v10 }
 0x314   :  { %371 = vmatpush.msrb.mxu2 %v689_v7  ;;  %v691_v9 = vpop.eup %690  ;;  %702 = vtanh.f32 %v332_v12 }
 0x315   :  { %v693_v11 = vpop.eup %692 }
 0x316   :  { %372 = vmatpush.msrb.mxu2 %v691_v9  ;;  %v695_v13 = vpop.eup %694 }
 0x317   :  { %v697_v14 = vpop.eup %696 }
 0x318   :  { %373 = vmatpush.msrb.mxu2 %v693_v11  ;;  %v699_v15 = vpop.eup %698 }
 0x319   :  { %v701_v16 = vpop.eup %700 }
 0x31a   :  { %374 = vmatpush.msrb.mxu2 %v695_v13  ;;  %v703_v17 = vpop.eup %702 }
 0x31c   :  { %375 = vmatpush.msrb.mxu2 %v697_v14 }
 0x31e   :  { %376 = vmatpush.msrb.mxu2 %v699_v15 }
 0x320   :  { %377 = vmatpush.msrb.mxu2 %v701_v16 }
 0x322   :  { %378 = vmatpush.msrb.mxu2 %v703_v17 }
 0x323   :  { %632 = vmatmul.msk.f32.vlgmr.msrb.gmra.mxu2 %vm240_vm0, %v945_v18 }
 0x32b   :  { %633 = vmatmul.msk.f32.gmra.mxu2 %vm240_vm0, %v949_v19 }
 0x333   :  { %634 = vmatmul.msk.f32.gmra.mxu2 %vm240_vm0, %v953_v20 }
 0x33b   :  { %635 = vmatmul.msk.f32.gmra.mxu2 %vm240_vm0, %v957_v21 }
 0x343   :  { %636 = vmatmul.msk.f32.gmra.mxu2 %vm240_vm0, %v961_v22 }
 0x34b   :  { %637 = vmatmul.msk.f32.gmra.mxu2 %vm240_vm0, %v965_v23 }
 0x353   :  { %638 = vmatmul.msk.f32.gmra.mxu2 %vm240_vm0, %v969_v24 }
 0x35b   :  { %639 = vmatmul.msk.f32.gmra.mxu2 %vm240_vm0, %v973_v25 }
 0x3a6   :  { %v380_v26 = vpop.f32.mrf.mxu2 }
 0x3a7   :  { %v381_v52 = vadd.f32 %v380_v26, %v997_v49 }
 0x3ae   :  { %v383_v27 = vpop.f32.mrf.mxu2 }
 0x3af   :  { %v384_v50 = vadd.f32 %v383_v27, %v994_v46 }
 0x3b6   :  { %v386_v28 = vpop.f32.mrf.mxu2 }
 0x3b7   :  { %v387_v47 = vadd.f32 %v386_v28, %v991_v43 }
 0x3be   :  { %v389_v29 = vpop.f32.mrf.mxu2 }
 0x3bf   :  { %v390_v44 = vadd.f32 %v389_v29, %v988_v41 }
 0x3c6   :  { %v392_v30 = vpop.f32.mrf.mxu2 }
 0x3c7   :  { %v393_v42 = vadd.f32 %v392_v30, %v985_v39 }
 0x3ce   :  { %v395_v31 = vpop.f32.mrf.mxu2 }
 0x3cf   :  { %v396_v40 = vadd.f32 %v395_v31, %v981_v36 }
 0x3d6   :  { %v398_v32 = vpop.f32.mrf.mxu2 }
 0x3d7   :  { %v399_v37 = vadd.f32 %v398_v32, %v977_v33 }
 0x3de   :  { %v401_v35 = vpop.f32.mrf.mxu2 }
 0x3df   :  { %v402_v38 = vadd.f32 %v401_v35, %v979_v34 }
 0x3e1   :  { %704 = vtanh.f32 %v402_v38 }
 0x3e2   :  { %706 = vtanh.f32 %v399_v37 }
 0x3e3   :  { %708 = vtanh.f32 %v396_v40 }
 0x3e4   :  { %710 = vtanh.f32 %v393_v42 }
 0x3e5   :  { %712 = vtanh.f32 %v390_v44 }
 0x3e6   :  { %714 = vtanh.f32 %v387_v47 }
 0x3e7   :  { %v705_v45 = vpop.eup %704  ;;  %716 = vtanh.f32 %v384_v50 }
 0x3e8   :  { %420 = vmatpush.msrb.mxu3 %v705_v45  ;;  %v707_v48 = vpop.eup %706  ;;  %718 = vtanh.f32 %v381_v52 }
 0x3e9   :  { %v709_v51 = vpop.eup %708 }
 0x3ea   :  { %421 = vmatpush.msrb.mxu3 %v707_v48  ;;  %v711_v53 = vpop.eup %710 }
 0x3eb   :  { %v713_v54 = vpop.eup %712 }
 0x3ec   :  { %422 = vmatpush.msrb.mxu3 %v709_v51  ;;  %v715_v55 = vpop.eup %714 }
 0x3ed   :  { %v717_v56 = vpop.eup %716 }
 0x3ee   :  { %423 = vmatpush.msrb.mxu3 %v711_v53  ;;  %v719_v57 = vpop.eup %718 }
 0x3f0   :  { %424 = vmatpush.msrb.mxu3 %v713_v54 }
 0x3f2   :  { %425 = vmatpush.msrb.mxu3 %v715_v55 }
 0x3f4   :  { %426 = vmatpush.msrb.mxu3 %v717_v56 }
 0x3f6   :  { %427 = vmatpush.msrb.mxu3 %v719_v57 }
 0x3f7   :  { %640 = vmatmul.msk.f32.vlgmr.msrb.gmra.mxu3 %vm240_vm0, %v945_v18 }
 0x3ff   :  { %641 = vmatmul.msk.f32.gmra.mxu3 %vm240_vm0, %v949_v19 }
 0x407   :  { %642 = vmatmul.msk.f32.gmra.mxu3 %vm240_vm0, %v953_v20 }
 0x40f   :  { %643 = vmatmul.msk.f32.gmra.mxu3 %vm240_vm0, %v957_v21 }
 0x417   :  { %644 = vmatmul.msk.f32.gmra.mxu3 %vm240_vm0, %v961_v22 }
 0x41f   :  { %645 = vmatmul.msk.f32.gmra.mxu3 %vm240_vm0, %v965_v23 }
 0x427   :  { %646 = vmatmul.msk.f32.gmra.mxu3 %vm240_vm0, %v969_v24 }
 0x42f   :  { %647 = vmatmul.msk.f32.gmra.mxu3 %vm240_vm0, %v973_v25 }
 0x47a   :  { %v429_v58 = vpop.f32.mrf.mxu3 }
 0x47b   :  { %v430_v12 = vadd.f32 %v429_v58, %v997_v49 }
 0x482   :  { %v432_v59 = vpop.f32.mrf.mxu3 }
 0x483   :  { %v433_v10 = vadd.f32 %v432_v59, %v994_v46 }
 0x48a   :  { %v435_v60 = vpop.f32.mrf.mxu3 }
 0x48b   :  { %v436_v8 = vadd.f32 %v435_v60, %v991_v43 }
 0x492   :  { %v438_v61 = vpop.f32.mrf.mxu3 }
 0x493   :  { %v439_v6 = vadd.f32 %v438_v61, %v988_v41 }
 0x49a   :  { %v441_v62 = vpop.f32.mrf.mxu3 }
 0x49b   :  { %v442_v5 = vadd.f32 %v441_v62, %v985_v39 }
 0x4a2   :  { %v444_v63 = vpop.f32.mrf.mxu3 }
 0x4a3   :  { %v445_v4 = vadd.f32 %v444_v63, %v981_v36 }
 0x4aa   :  { %v447_v0 = vpop.f32.mrf.mxu3 }
 0x4ab   :  { %v448_v2 = vadd.f32 %v447_v0, %v977_v33 }
 0x4b2   :  { %v450_v1 = vpop.f32.mrf.mxu3 }
 0x4b3   :  { %v451_v3 = vadd.f32 %v450_v1, %v979_v34 }
 0x4b5   :  { %720 = vtanh.f32 %v451_v3 }
 0x4b6   :  { %722 = vtanh.f32 %v448_v2 }
 0x4b7   :  { %724 = vtanh.f32 %v445_v4 }
 0x4b8   :  { %726 = vtanh.f32 %v442_v5 }
 0x4b9   :  { %728 = vtanh.f32 %v439_v6 }
 0x4ba   :  { %730 = vtanh.f32 %v436_v8 }
 0x4bb   :  { %v721_v7 = vpop.eup %720  ;;  %732 = vtanh.f32 %v433_v10 }
 0x4bc   :  { %469 = vmatpush.msrb.mxu0 %v721_v7  ;;  %656 = vmatpush.msrb.mxu1 %v721_v7  ;;  %v723_v9 = vpop.eup %722  ;;  %734 = vtanh.f32 %v430_v12 }
 0x4bd   :  { %v725_v11 = vpop.eup %724 }
 0x4be   :  { %470 = vmatpush.msrb.mxu0 %v723_v9  ;;  %657 = vmatpush.msrb.mxu1 %v723_v9  ;;  %v727_v13 = vpop.eup %726 }
 0x4bf   :  { %v729_v14 = vpop.eup %728 }
 0x4c0   :  { %471 = vmatpush.msrb.mxu0 %v725_v11  ;;  %658 = vmatpush.msrb.mxu1 %v725_v11  ;;  %v731_v15 = vpop.eup %730 }
 0x4c1   :  { %v733_v16 = vpop.eup %732 }
 0x4c2   :  { %472 = vmatpush.msrb.mxu0 %v727_v13  ;;  %659 = vmatpush.msrb.mxu1 %v727_v13  ;;  %v735_v17 = vpop.eup %734 }
 0x4c4   :  { %473 = vmatpush.msrb.mxu0 %v729_v14  ;;  %660 = vmatpush.msrb.mxu1 %v729_v14 }
 0x4c6   :  { %474 = vmatpush.msrb.mxu0 %v731_v15  ;;  %661 = vmatpush.msrb.mxu1 %v731_v15 }
 0x4c8   :  { %475 = vmatpush.msrb.mxu0 %v733_v16  ;;  %662 = vmatpush.msrb.mxu1 %v733_v16 }
 0x4ca   :  { %476 = vmatpush.msrb.mxu0 %v735_v17  ;;  %663 = vmatpush.msrb.mxu1 %v735_v17 }
 0x4cb   :  { %648 = vmatmul.msk.f32.vlgmr.msrb.gmra.mxu0 %vm240_vm0, %v945_v18  ;;  %653 = vmatmul.msk.f32.vlgmr.msrb.gmra.mxu1 %vm240_vm0, %v965_v23  ;;  %v510_v18 = vlaneseq }
 0x4cd   :  { %v511_v27 = vand.u32 127, %v510_v18 }
 0x4cf   :  { %vm512_vm1 = vcmp.lt.s32.totalorder %v511_v27, 8 }
 0x4d3   :  { %649 = vmatmul.msk.f32.gmra.mxu0 %vm240_vm0, %v949_v19  ;;  %654 = vmatmul.msk.f32.gmra.mxu1 %vm240_vm0, %v969_v24 }
 0x4db   :  { %650 = vmatmul.msk.f32.gmra.mxu0 %vm240_vm0, %v953_v20  ;;  %655 = vmatmul.msk.f32.gmra.mxu1 %vm240_vm0, %v973_v25 }
 0x4e3   :  { %651 = vmatmul.msk.f32.gmra.mxu0 %vm240_vm0, %v957_v21 }
 0x4eb   :  { %652 = vmatmul.msk.f32.gmra.mxu0 %vm240_vm0, %v961_v22 }
 0x548   :  { %v478_v23 = vpop.f32.mrf.mxu0  ;;  %v493_v26 = vpop.f32.mrf.mxu1 }
 0x549   :  { %v479_v19 = vadd.f32 %v478_v23, %v997_v49 }
 0x54b   :  { %736 = vtanh.f32 %v479_v19 }
 0x550   :  { %v481_v24 = vpop.f32.mrf.mxu0  ;;  %v496_v29 = vpop.f32.mrf.mxu1 }
 0x551   :  { %v737_v28 = vpop.eup %736  ;;  %v482_v20 = vadd.f32 %v481_v24, %v994_v46  ;;  %v497_v21 = vadd.f32 %v496_v29, %v977_v33 }
 0x552   :  { %v513_v25 = vsel %vm512_vm1, %v737_v28, -1e+30 }
 0x553   :  { %738 = vtanh.f32 %v482_v20  ;;  %521 = vmax.xlane.f32.xlu0 %v513_v25 }
 0x554   :  { %740 = vtanh.f32 %v497_v21 }
 0x558   :  { %v484_v22 = vpop.f32.mrf.mxu0  ;;  %v499_v38 = vpop.f32.mrf.mxu1 }
 0x559   :  { %v739_v30 = vpop.eup %738  ;;  %v485_v31 = vadd.f32 %v484_v22, %v991_v43  ;;  %v500_v33 = vadd.f32 %v499_v38, %v979_v34 }
 0x55a   :  { %v514_v49 = vsel %vm512_vm1, %v739_v30, -1e+30  ;;  %v741_v32 = vpop.eup %740 }
 0x55b   :  { %742 = vtanh.f32 %v485_v31  ;;  %523 = vmax.xlane.f32.xlu0 %v514_v49  ;;  %v519_v42 = vsel %vm512_vm1, %v741_v32, -1e+30 }
 0x560   :  { %v487_v35 = vpop.f32.mrf.mxu0 }
 0x561   :  { %v743_v37 = vpop.eup %742  ;;  %v488_v46 = vadd.f32 %v487_v35, %v988_v41  ;;  %v494_v41 = vadd.f32 %v493_v26, %v981_v36 }
 0x562   :  { %v515_v40 = vsel %vm512_vm1, %v743_v37, -1e+30 }
 0x563   :  { %744 = vtanh.f32 %v488_v46  ;;  %525 = vmax.xlane.f32.xlu1 %v515_v40  ;;  %533 = vmax.xlane.f32.xlu0 %v519_v42 }
 0x564   :  { %746 = vtanh.f32 %v500_v33 }
 0x568   :  { %v490_v43 = vpop.f32.mrf.mxu0 }
 0x569   :  { %v745_v44 = vpop.eup %744  ;;  %v491_v45 = vadd.f32 %v490_v43, %v985_v39 }
 0x56a   :  { %v516_v47 = vsel %vm512_vm1, %v745_v44, -1e+30  ;;  %v747_v48 = vpop.eup %746 }
 0x56b   :  { %748 = vtanh.f32 %v491_v45  ;;  %527 = vmax.xlane.f32.xlu1 %v516_v47  ;;  %v520_v52 = vsel %vm512_vm1, %v747_v48, -1e+30 }
 0x56c   :  { %750 = vtanh.f32 %v494_v41 }
 0x571   :  { %v749_v50 = vpop.eup %748 }
 0x572   :  { %v517_v51 = vsel %vm512_vm1, %v749_v50, -1e+30  ;;  %v751_v34 = vpop.eup %750 }
 0x573   :  { %529 = vmax.xlane.f32.xlu2 %v517_v51  ;;  %535 = vmax.xlane.f32.xlu1 %v520_v52  ;;  %v518_v53 = vsel %vm512_vm1, %v751_v34, -1e+30 }
 0x57b   :  { %531 = vmax.xlane.f32.xlu2 %v518_v53 }
 0x5c6   :  { %v522_v39 = vpop.xlane.xlu0 %521 }
 0x5c7   :  { %v537_v54 = vsub.f32 %v513_v25, %v522_v39 }
 0x5c9   :  { %v545_v55 = vmul.f32 1.442695, %v537_v54 }
 0x5cb   :  { %752 = vpow2.f32 %v545_v55 }
 0x5ce   :  { %v524_v56 = vpop.xlane.xlu0 %523 }
 0x5cf   :  { %v538_v57 = vsub.f32 %v514_v49, %v524_v56 }
 0x5d1   :  { %v753_v36 = vpop.eup %752  ;;  %v547_v58 = vmul.f32 1.442695, %v538_v57 }
 0x5d2   :  { %561 = vadd.xlane.f32.xlu2 %v753_v36 }
 0x5d3   :  { %754 = vpow2.f32 %v547_v58 }
 0x5d6   :  { %v526_v59 = vpop.xlane.xlu1 %525  ;;  %v534_v0 = vpop.xlane.xlu0 %533 }
 0x5d7   :  { %v539_v60 = vsub.f32 %v515_v40, %v526_v59  ;;  %v1105_v4 = vsub.f32 %v519_v42, %v534_v0 }
 0x5d9   :  { %v755_v61 = vpop.eup %754  ;;  %v549_v62 = vmul.f32 1.442695, %v539_v60  ;;  %v557_v5 = vmul.f32 1.442695, %v1105_v4 }
 0x5da   :  { %563 = vadd.xlane.f32.xlu0 %v755_v61 }
 0x5db   :  { %756 = vpow2.f32 %v549_v62 }
 0x5de   :  { %v528_v63 = vpop.xlane.xlu1 %527 }
 0x5df   :  { %v540_v1 = vsub.f32 %v516_v47, %v528_v63 }
 0x5e1   :  { %v757_v2 = vpop.eup %756  ;;  %v551_v3 = vmul.f32 1.442695, %v540_v1 }
 0x5e2   :  { %565 = vadd.xlane.f32.xlu1 %v757_v2 }
 0x5e3   :  { %758 = vpow2.f32 %v551_v3 }
 0x5e4   :  { %760 = vpow2.f32 %v557_v5 }
 0x5e6   :  { %v530_v6 = vpop.xlane.xlu2 %529  ;;  %v536_v8 = vpop.xlane.xlu1 %535 }
 0x5e7   :  { %v541_v7 = vsub.f32 %v517_v51, %v530_v6  ;;  %v1108_v11 = vsub.f32 %v520_v52, %v536_v8 }
 0x5e9   :  { %v759_v9 = vpop.eup %758  ;;  %v553_v10 = vmul.f32 1.442695, %v541_v7  ;;  %v559_v12 = vmul.f32 1.442695, %v1108_v11 }
 0x5ea   :  { %567 = vadd.xlane.f32.xlu2 %v759_v9  ;;  %v761_v15 = vpop.eup %760 }
 0x5eb   :  { %762 = vpow2.f32 %v553_v10 }
 0x5ec   :  { %764 = vpow2.f32 %v559_v12 }
 0x5ee   :  { %v532_v13 = vpop.xlane.xlu2 %531 }
 0x5ef   :  { %v542_v14 = vsub.f32 %v518_v53, %v532_v13 }
 0x5f1   :  { %v763_v16 = vpop.eup %762  ;;  %v555_v17 = vmul.f32 1.442695, %v542_v14 }
 0x5f2   :  { %569 = vadd.xlane.f32.xlu0 %v763_v16  ;;  %573 = vadd.xlane.f32.xlu2 %v761_v15  ;;  %v765_v18 = vpop.eup %764 }
 0x5f3   :  { %766 = vpow2.f32 %v555_v17 }
 0x5f9   :  { %v767_v23 = vpop.eup %766 }
 0x5fa   :  { %571 = vadd.xlane.f32.xlu1 %v767_v23  ;;  %575 = vadd.xlane.f32.xlu0 %v765_v18 }
 0x645   :  { %v562_v26 = vpop.xlane.xlu2 %561 }
 0x646   :  { %768 = vlog2.f32 %v562_v26 }
 0x64c   :  { %v769_v19 = vpop.eup %768 }
 0x64d   :  { %v578_v27 = vmul.f32 0.6931472, %v769_v19  ;;  %v564_v24 = vpop.xlane.xlu0 %563 }
 0x64e   :  { %770 = vlog2.f32 %v564_v24 }
 0x64f   :  { %v593_v28 = vsub.f32 %v537_v54, %v578_v27 }
 0x651   :  { %601 = vst [vmem:[%s1143_s6] sm:$0xff] %v593_v28 }
 0x654   :  { %v771_v20 = vpop.eup %770 }
 0x655   :  { %v580_v29 = vmul.f32 0.6931472, %v771_v20  ;;  %v566_v25 = vpop.xlane.xlu1 %565 }
 0x656   :  { %772 = vlog2.f32 %v566_v25 }
 0x657   :  { %v594_v21 = vsub.f32 %v538_v57, %v580_v29 }
 0x659   :  { %602 = vst [vmem:[%s1143_s6 + $0x8] sm:$0xff] %v594_v21 }
 0x65c   :  { %v773_v22 = vpop.eup %772 }
 0x65d   :  { %v582_v30 = vmul.f32 0.6931472, %v773_v22  ;;  %v568_v31 = vpop.xlane.xlu2 %567 }
 0x65e   :  { %774 = vlog2.f32 %v568_v31 }
 0x65f   :  { %v595_v49 = vsub.f32 %v539_v60, %v582_v30 }
 0x661   :  { %603 = vst [vmem:[%s1143_s6 + $0x10] sm:$0xff] %v595_v49 }
 0x664   :  { %v775_v32 = vpop.eup %774 }
 0x665   :  { %v584_v35 = vmul.f32 0.6931472, %v775_v32  ;;  %v574_v37 = vpop.xlane.xlu2 %573  ;;  %v570_v46 = vpop.xlane.xlu0 %569 }
 0x666   :  { %776 = vlog2.f32 %v574_v37 }
 0x667   :  { %v596_v38 = vsub.f32 %v540_v1, %v584_v35  ;;  %778 = vlog2.f32 %v570_v46 }
 0x669   :  { %604 = vst [vmem:[%s1143_s6 + $0x18] sm:$0xff] %v596_v38 }
 0x66c   :  { %v777_v40 = vpop.eup %776 }
 0x66d   :  { %v779_v42 = vpop.eup %778  ;;  %v590_v33 = vmul.f32 0.6931472, %v777_v40  ;;  %v572_v43 = vpop.xlane.xlu1 %571 }
 0x66e   :  { %v576_v44 = vpop.xlane.xlu0 %575  ;;  %v586_v45 = vmul.f32 0.6931472, %v779_v42  ;;  %780 = vlog2.f32 %v572_v43 }
 0x66f   :  { %v599_v47 = vsub.f32 %v1105_v4, %v590_v33  ;;  %782 = vlog2.f32 %v576_v44 }
 0x670   :  { %v597_v41 = vsub.f32 %v541_v7, %v586_v45 }
 0x671   :  { %607 = vst [vmem:[%s1143_s6 + $0x30] sm:$0xff] %v599_v47 }
 0x672   :  { %605 = vst [vmem:[%s1143_s6 + $0x20] sm:$0xff] %v597_v41 }
 0x674   :  { %v781_v48 = vpop.eup %780 }
 0x675   :  { %v783_v50 = vpop.eup %782  ;;  %v588_v51 = vmul.f32 0.6931472, %v781_v48 }
 0x676   :  { %v592_v52 = vmul.f32 0.6931472, %v783_v50 }
 0x677   :  { %v598_v34 = vsub.f32 %v542_v14, %v588_v51 }
 0x678   :  { %v600_v53 = vsub.f32 %v1108_v11, %v592_v52 }
 0x679   :  { %606 = vst [vmem:[%s1143_s6 + $0x28] sm:$0xff] %v598_v34 }
 0x67a   :  { %608 = vst [vmem:[%s1143_s6 + $0x38] sm:$0xff] %v600_v53 }
 0x67b   :  { %613 = vsyncpa [#allocation3], 1 }
 0x67c   :  { %614 = vsyncpa [#allocation5], 1 }
 0x67d   :  { %615 = vsyncpa [#allocation8], 1 }

</bundles_post_ra>
